<compile_context>
chip_gen: v7x
topology: tpu7x:2x2x1
jax: 0.10.0
libtpu: 0.0.40
codegen_flags: <defaults>
</compile_context>

<pallas_src>
import jax
import jax.numpy as jnp
from jax.experimental import pallas as pl
from jax.experimental.pallas import tpu as pltpu


def _cmpm_kernel(imgs_ref, txts_ref, imgs_t_ref, txts_t_ref, log_mask_ref,
                 out_ref):
    imgs = imgs_ref[...]        # (P, B, D) f32
    txts = txts_ref[...]        # (P, B, D) f32
    imgs_t = imgs_t_ref[...]    # (P, D, B) f32 (pre-transposed in wrapper)
    txts_t = txts_t_ref[...]    # (P, D, B) f32
    log_mask = log_mask_ref[...]  # (B, B) f32, precomputed in wrapper

    # Reciprocal row L2 norms, computed in lane layout (P, 1, B) directly from
    # the transposed copies (sublane reduce; no relayout needed).
    img_inv = jax.lax.rsqrt(jnp.sum(imgs_t * imgs_t, axis=1, keepdims=True))
    txt_inv = jax.lax.rsqrt(jnp.sum(txts_t * txts_t, axis=1, keepdims=True))
    img_norm_t = imgs_t * img_inv   # (P, D, B): column j = img[p, j] / ||img[p, j]||
    txt_norm_t = txts_t * txt_inv   # (P, D, B)

    # Batched cross-modal projections on the MXU (no rhs transpose needed):
    #   ipt[p, i, j] = img[p, i] . txt_norm[p, j]
    #   tpi[p, i, j] = txt[p, i] . img_norm[p, j]
    ipt = jnp.einsum('pid,pdj->pij', imgs, txt_norm_t,
                     preferred_element_type=jnp.float32)   # (P, B, B)
    tpi = jnp.einsum('pid,pdj->pij', txts, img_norm_t,
                     preferred_element_type=jnp.float32)   # (P, B, B)

    b = ipt.shape[1]
    lm = log_mask[None, :, :]                               # (1, B, B)

    def kl_sum(logits):
        # softmax / log_softmax over the last (lane) axis, per (p, i) row.
        m = jnp.max(logits, axis=2, keepdims=True)
        z = logits - m
        lse = jnp.log(jnp.sum(jnp.exp(z), axis=2, keepdims=True))
        log_sm = z - lse
        sm = jnp.exp(log_sm)
        # Sum over p, i, j; dividing by B afterwards yields
        # sum_p mean_i sum_j (...), i.e. the per-level batch means summed.
        return jnp.sum(sm * (log_sm - lm))

    loss = (kl_sum(ipt) + kl_sum(tpi)) / b
    out_ref[...] = jnp.zeros_like(out_ref) + loss           # single (1,1) store


def cmpm_loss_pallas(img_embeds, txt_embeds, labels, epsilon):
    """img_embeds / txt_embeds: lists of P arrays of shape (B, D)."""
    imgs = jnp.stack(img_embeds).astype(jnp.float32)   # (P, B, D)
    txts = jnp.stack(txt_embeds).astype(jnp.float32)   # (P, B, D)
    P, B, D = imgs.shape

    # Free layout plumbing in XLA: transposed copies so the kernel's MXU
    # contraction needs no in-kernel transpose.
    imgs_t = jnp.swapaxes(imgs, 1, 2)                  # (P, D, B)
    txts_t = jnp.swapaxes(txts, 1, 2)                  # (P, D, B)

    # Grid-invariant label-mask term, hoisted out of the kernel.
    # Reproduces PyTorch `mask / mask.norm(dim=1)` (trailing-dim broadcast:
    # column j divided by ||mask[j, :]||).
    mask = (labels[:, None] == labels[None, :]).astype(jnp.float32)  # (B, B)
    mask_norm = mask / jnp.linalg.norm(mask, axis=1)
    log_mask = jnp.log(mask_norm + jnp.float32(epsilon))             # (B, B)

    vmem = pltpu.MemorySpace.VMEM
    out = pl.pallas_call(
        _cmpm_kernel,
        out_shape=jax.ShapeDtypeStruct((1, 1), jnp.float32),
        in_specs=[pl.BlockSpec(memory_space=vmem)] * 5,
        out_specs=pl.BlockSpec(memory_space=vmem),
    )(imgs, txts, imgs_t, txts_t, log_mask)
    return out[0, 0]


def cmpm_loss_ref(img, txt, labels, eps):
    """Pure-JAX reference matching the PyTorch semantics exactly."""
    mask = (labels[:, None] == labels[None, :]).astype(jnp.float32)
    img_n = img / jnp.linalg.norm(img, axis=1, keepdims=True)
    txt_n = txt / jnp.linalg.norm(txt, axis=1, keepdims=True)
    ipt = img @ txt_n.T
    tpi = txt @ img_n.T
    mask_norm = mask / jnp.linalg.norm(mask, axis=1)   # trailing-dim broadcast
    log_mask = jnp.log(mask_norm + eps)

    def term(logits):
        lsm = jax.nn.log_softmax(logits, axis=1)
        sm = jax.nn.softmax(logits, axis=1)
        return jnp.mean(jnp.sum(sm * (lsm - log_mask), axis=1))

    return term(ipt) + term(tpi)


if __name__ == "__main__":
    B, D = 8, 32          # batch, feature_size
    num_classes = 10
    epsilon = 1e-8

    key = jax.random.PRNGKey(0)
    keys = jax.random.split(key, 12)

    # 5 image feature levels + 5 text feature levels, each (B, D) float32.
    img_feats = [jax.random.normal(keys[i], (B, D), jnp.float32) for i in range(5)]
    txt_feats = [jax.random.normal(keys[5 + i], (B, D), jnp.float32) for i in range(5)]
    labels = jax.random.randint(keys[10], (B,), 0, num_classes, jnp.int32)

    # Parameter W (feature_size, num_classes), xavier-uniform init. It is only
    # used by the CMPC branch, which this forward pass never takes (CMPM only),
    # so it does not participate in the kernel. Initialized for fidelity.
    limit = (6.0 / (D + num_classes)) ** 0.5
    W = jax.random.uniform(keys[11], (D, num_classes), jnp.float32, -limit, limit)

    loss = cmpm_loss_pallas(img_feats, txt_feats, labels, epsilon)
    jax.block_until_ready(loss)

    # Cross-check against the pure-JAX reference (sum over the 5 levels).
    ref = sum(cmpm_loss_ref(i, t, labels, epsilon)
              for i, t in zip(img_feats, txt_feats))
    assert jnp.allclose(loss, ref, rtol=1e-3, atol=1e-4), (loss, ref)

    print("KERNEL_OK")
</pallas_src>

<mosaic_0001>
module attributes {stable_mosaic.version = 11 : i64} {
  func.func @_cmpm_kernel(%arg0: memref<5x8x32xf32, #tpu.memory_space<vmem>>, %arg1: memref<5x8x32xf32, #tpu.memory_space<vmem>>, %arg2: memref<5x32x8xf32, #tpu.memory_space<vmem>>, %arg3: memref<5x32x8xf32, #tpu.memory_space<vmem>>, %arg4: memref<8x8xf32, #tpu.memory_space<vmem>>, %arg5: memref<1x1xf32, #tpu.memory_space<vmem>>) attributes {dimension_semantics = [], scalar_prefetch = 0 : i64, scratch_operands = 0 : i64, tpu.core_type = #tpu.core_type<tc>} {
    %c0 = arith.constant 0 : index
    %c0_0 = arith.constant 0 : index
    %c0_1 = arith.constant 0 : index
    %0 = vector.load %arg0[%c0, %c0_0, %c0_1] : memref<5x8x32xf32, #tpu.memory_space<vmem>>, vector<5x8x32xf32>
    %c0_2 = arith.constant 0 : index
    %c0_3 = arith.constant 0 : index
    %c0_4 = arith.constant 0 : index
    %1 = vector.load %arg1[%c0_2, %c0_3, %c0_4] : memref<5x8x32xf32, #tpu.memory_space<vmem>>, vector<5x8x32xf32>
    %c0_5 = arith.constant 0 : index
    %c0_6 = arith.constant 0 : index
    %c0_7 = arith.constant 0 : index
    %2 = vector.load %arg2[%c0_5, %c0_6, %c0_7] : memref<5x32x8xf32, #tpu.memory_space<vmem>>, vector<5x32x8xf32>
    %c0_8 = arith.constant 0 : index
    %c0_9 = arith.constant 0 : index
    %c0_10 = arith.constant 0 : index
    %3 = vector.load %arg3[%c0_8, %c0_9, %c0_10] : memref<5x32x8xf32, #tpu.memory_space<vmem>>, vector<5x32x8xf32>
    %c0_11 = arith.constant 0 : index
    %c0_12 = arith.constant 0 : index
    %4 = vector.load %arg4[%c0_11, %c0_12] : memref<8x8xf32, #tpu.memory_space<vmem>>, vector<8x8xf32>
    %5 = arith.mulf %2, %2 : vector<5x32x8xf32>
    %cst = arith.constant dense<0.000000e+00> : vector<5x8xf32>
    %6 = vector.multi_reduction <add>, %5, %cst [1] : vector<5x32x8xf32> to vector<5x8xf32>
    %7 = vector.shape_cast %6 : vector<5x8xf32> to vector<5x1x8xf32>
    %8 = math.rsqrt %7 : vector<5x1x8xf32>
    %9 = arith.mulf %3, %3 : vector<5x32x8xf32>
    %cst_13 = arith.constant dense<0.000000e+00> : vector<5x8xf32>
    %10 = vector.multi_reduction <add>, %9, %cst_13 [1] : vector<5x32x8xf32> to vector<5x8xf32>
    %11 = vector.shape_cast %10 : vector<5x8xf32> to vector<5x1x8xf32>
    %12 = math.rsqrt %11 : vector<5x1x8xf32>
    %13 = vector.broadcast %8 : vector<5x1x8xf32> to vector<5x32x8xf32>
    %14 = arith.mulf %2, %13 : vector<5x32x8xf32>
    %15 = vector.broadcast %12 : vector<5x1x8xf32> to vector<5x32x8xf32>
    %16 = arith.mulf %3, %15 : vector<5x32x8xf32>
    "tpu.trace_start"() <{level = 10 : i32, message = "pid,pdj->pij"}> : () -> ()
    %cst_14 = arith.constant dense<0.000000e+00> : vector<5x8x8xf32>
    %17 = tpu.matmul %0, %16, %cst_14 {dimension_numbers = #tpu.dot_dimension_numbers<[2], [1], [1], [2], [0, 0, 0, 1, 1, 2], [0], [0]>} : vector<5x8x32xf32>, vector<5x32x8xf32>, vector<5x8x8xf32> -> vector<5x8x8xf32>
    %cst_15 = arith.constant dense<0.000000e+00> : vector<5x8x8xf32>
    %18 = tpu.matmul %1, %14, %cst_15 {dimension_numbers = #tpu.dot_dimension_numbers<[2], [1], [1], [2], [0, 0, 0, 1, 1, 2], [0], [0]>} : vector<5x8x32xf32>, vector<5x32x8xf32>, vector<5x8x8xf32> -> vector<5x8x8xf32>
    "tpu.trace_stop"() : () -> ()
    %19 = vector.shape_cast %4 : vector<8x8xf32> to vector<1x8x8xf32>
    %cst_16 = arith.constant dense<0xFF800000> : vector<5x8xf32>
    %20 = vector.multi_reduction <maximumf>, %17, %cst_16 [2] : vector<5x8x8xf32> to vector<5x8xf32>
    %21 = vector.shape_cast %20 : vector<5x8xf32> to vector<5x8x1xf32>
    %22 = vector.broadcast %21 : vector<5x8x1xf32> to vector<5x8x8xf32>
    %23 = arith.subf %17, %22 : vector<5x8x8xf32>
    %24 = math.exp %23 : vector<5x8x8xf32>
    %cst_17 = arith.constant dense<0.000000e+00> : vector<5x8xf32>
    %25 = vector.multi_reduction <add>, %24, %cst_17 [2] : vector<5x8x8xf32> to vector<5x8xf32>
    %26 = vector.shape_cast %25 : vector<5x8xf32> to vector<5x8x1xf32>
    %27 = math.log %26 : vector<5x8x1xf32>
    %28 = vector.broadcast %27 : vector<5x8x1xf32> to vector<5x8x8xf32>
    %29 = arith.subf %23, %28 : vector<5x8x8xf32>
    %30 = math.exp %29 : vector<5x8x8xf32>
    %31 = vector.broadcast %19 : vector<1x8x8xf32> to vector<5x8x8xf32>
    %32 = arith.subf %29, %31 : vector<5x8x8xf32>
    %33 = arith.mulf %30, %32 : vector<5x8x8xf32>
    %34 = vector.shape_cast %33 : vector<5x8x8xf32> to vector<1x5x8x8xf32>
    %cst_18 = arith.constant dense<0.000000e+00> : vector<1xf32>
    %35 = vector.multi_reduction <add>, %34, %cst_18 [1, 2, 3] : vector<1x5x8x8xf32> to vector<1xf32>
    %36 = vector.shape_cast %35 : vector<1xf32> to vector<1x1x1x1xf32>
    %37 = vector.extract %36[0, 0, 0, 0] : f32 from vector<1x1x1x1xf32>
    %cst_19 = arith.constant dense<0xFF800000> : vector<5x8xf32>
    %38 = vector.multi_reduction <maximumf>, %18, %cst_19 [2] : vector<5x8x8xf32> to vector<5x8xf32>
    %39 = vector.shape_cast %38 : vector<5x8xf32> to vector<5x8x1xf32>
    %40 = vector.broadcast %39 : vector<5x8x1xf32> to vector<5x8x8xf32>
    %41 = arith.subf %18, %40 : vector<5x8x8xf32>
    %42 = math.exp %41 : vector<5x8x8xf32>
    %cst_20 = arith.constant dense<0.000000e+00> : vector<5x8xf32>
    %43 = vector.multi_reduction <add>, %42, %cst_20 [2] : vector<5x8x8xf32> to vector<5x8xf32>
    %44 = vector.shape_cast %43 : vector<5x8xf32> to vector<5x8x1xf32>
    %45 = math.log %44 : vector<5x8x1xf32>
    %46 = vector.broadcast %45 : vector<5x8x1xf32> to vector<5x8x8xf32>
    %47 = arith.subf %41, %46 : vector<5x8x8xf32>
    %48 = math.exp %47 : vector<5x8x8xf32>
    %49 = vector.broadcast %19 : vector<1x8x8xf32> to vector<5x8x8xf32>
    %50 = arith.subf %47, %49 : vector<5x8x8xf32>
    %51 = arith.mulf %48, %50 : vector<5x8x8xf32>
    %52 = vector.shape_cast %51 : vector<5x8x8xf32> to vector<1x5x8x8xf32>
    %cst_21 = arith.constant dense<0.000000e+00> : vector<1xf32>
    %53 = vector.multi_reduction <add>, %52, %cst_21 [1, 2, 3] : vector<1x5x8x8xf32> to vector<1xf32>
    %54 = vector.shape_cast %53 : vector<1xf32> to vector<1x1x1x1xf32>
    %55 = vector.extract %54[0, 0, 0, 0] : f32 from vector<1x1x1x1xf32>
    %56 = arith.addf %37, %55 : f32
    %cst_22 = arith.constant 8.000000e+00 : f32
    %57 = arith.divf %56, %cst_22 : f32
    %cst_23 = arith.constant 0.000000e+00 : f32
    %58 = vector.broadcast %cst_23 : f32 to vector<1x1xf32>
    %59 = vector.broadcast %57 : f32 to vector<1x1xf32>
    %60 = arith.addf %58, %59 : vector<1x1xf32>
    %c0_24 = arith.constant 0 : index
    %c0_25 = arith.constant 0 : index
    %61 = vector.load %arg5[%c0_24, %c0_25] : memref<1x1xf32, #tpu.memory_space<vmem>>, vector<1x1xf32>
    tpu.vector_store %arg5[%c0_24, %c0_25], %60 {strides = array<i32>} : memref<1x1xf32, #tpu.memory_space<vmem>>, vector<1x1xf32>,
    return
  }
}

</mosaic_0001>

<bundles_post_ra>
// kernel: tpu_custom_call.1
= control target key start
LH: loop header
LB: loop body
LE: loop exit
PB: predicated region body
PF: predicated region fallthrough
CT: control target
= control target key end

     0   :  { %vm92_vm0 = vcmask 64512   ;;  %v1584_v3 = vmov 0.0|0.0   ;;  %vm1585_vm1 = vmmov 0   ;;  %v1586_v15 = vmov 0.0   ;;  %s2161_s0 = inlined_call_operand.vmem [shape: f32[5,8,32], index: 0, kind: input, shape index: {}]   ;;  %s2162_s1 = inlined_call_operand.vmem [shape: f32[5,8,32], index: 1, kind: input, shape index: {}]   ;;  %s2163_s2 = inlined_call_operand.vmem [shape: f32[5,32,8], index: 2, kind: input, shape index: {}]   ;;  %s2164_s3 = inlined_call_operand.vmem [shape: f32[5,32,8], index: 3, kind: input, shape index: {}]   ;;  %s2165_s4 = inlined_call_operand.vmem [shape: f32[8,8], index: 4, kind: input, shape index: {}]   ;;  %s2166_s5 = inlined_call_operand.hbm [shape: f32[1,1], index: 5, kind: output, shape index: {}]  }
   0x1   :  { %v1621_v0 = vld [vmem:[%s2164_s3] sm:$0xff]  ;;  %v1626_v1 = vld [vmem:[%s2164_s3 + $0x8] sm:$0xff]  ;;  %v1631_v2 = vld [vmem:[%s2164_s3 + $0x10] sm:$0xff]  ;;  %1412 = vmatprep.subr.bf16.mxu0 %v1584_v3  ;;  %1418 = vmatprep.subr.bf16.mxu1 %v1584_v3 }
   0x2   :  { %v1638_v4 = vld [vmem:[%s2164_s3 + $0x18] sm:$0xff]  ;;  %v163_v5 = vmul.f32 %v1621_v0, %v1621_v0  ;;  %v164_v6 = vmul.f32 %v1626_v1, %v1626_v1  ;;  %v165_v7 = vmul.f32 %v1631_v2, %v1631_v2  ;;  %v1649_v8 = vld [vmem:[%s2164_s3 + $0x20] sm:$0xff]  ;;  %v1654_v9 = vld [vmem:[%s2164_s3 + $0x28] sm:$0xff]  ;;  %1310 = vmatprep.mubr.msk.f32.mxu0 %vm1585_vm1, %v1586_v15  ;;  %1321 = vmatprep.mubr.msk.f32.mxu1 %vm1585_vm1, %v1586_v15 }
   0x3   :  { %v166_v10 = vmul.f32 %v1638_v4, %v1638_v4  ;;  %v1661_v11 = vld [vmem:[%s2164_s3 + $0x30] sm:$0xff]  ;;  %v1666_v12 = vld [vmem:[%s2164_s3 + $0x38] sm:$0xff]  ;;  %v167_v13 = vmul.f32 %v1649_v8, %v1649_v8  ;;  %v168_v14 = vmul.f32 %v1654_v9, %v1654_v9  ;;  %v1684_v20 = vld [vmem:[%s2164_s3 + $0x40] sm:$0xff] }
   0x4   :  { %v183_v16 = vsel %vm92_vm0, %v163_v5, 0.0  ;;  %v184_v17 = vsel %vm92_vm0, %v164_v6, 0.0  ;;  %v186_v18 = vsel %vm92_vm0, %v165_v7, 0.0  ;;  %v169_v19 = vmul.f32 %v1661_v11, %v1661_v11  ;;  %v1689_v21 = vld [vmem:[%s2164_s3 + $0x48] sm:$0xff]  ;;  %v1698_v26 = vld [vmem:[%s2164_s3 + $0x50] sm:$0xff]  ;;  %v1703_v27 = vld [vmem:[%s2164_s3 + $0x58] sm:$0xff] }
   0x5   :  { %v185_v22 = vadd.f32 %v184_v17, %v183_v16  ;;  %v188_v23 = vsel %vm92_vm0, %v166_v10, 0.0  ;;  %v170_v24 = vmul.f32 %v1666_v12, %v1666_v12  ;;  %v196_v25 = vsel %vm92_vm0, %v167_v13, 0.0  ;;  %v1708_v28 = vld [vmem:[%s2164_s3 + $0x60] sm:$0xff]  ;;  %v1722_v37 = vld [vmem:[%s2164_s3 + $0x68] sm:$0xff]  ;;  %v1727_v38 = vld [vmem:[%s2164_s3 + $0x70] sm:$0xff] }
   0x6   :  { %v197_v29 = vsel %vm92_vm0, %v168_v14, 0.0  ;;  %v199_v30 = vsel %vm92_vm0, %v169_v19, 0.0  ;;  %v171_v31 = vmul.f32 %v1684_v20, %v1684_v20  ;;  %v172_v32 = vmul.f32 %v1689_v21, %v1689_v21  ;;  %v1732_v39 = vld [vmem:[%s2164_s3 + $0x78] sm:$0xff]  ;;  %v1744_v48 = vld [vmem:[%s2164_s3 + $0x80] sm:$0xff]  ;;  %v1757_v57 = vld [vmem:[%s2164_s3 + $0x88] sm:$0xff] }
   0x7   :  { %v187_v33 = vadd.f32 %v186_v18, %v185_v22  ;;  %v198_v34 = vadd.f32 %v197_v29, %v196_v25  ;;  %v201_v35 = vsel %vm92_vm0, %v170_v24, 0.0  ;;  %v173_v36 = vmul.f32 %v1698_v26, %v1698_v26  ;;  %v1762_v58 = vld [vmem:[%s2164_s3 + $0x90] sm:$0xff]  ;;  %v1767_v59 = vld [vmem:[%s2164_s3 + $0x98] sm:$0xff]  ;;  %v1777_v13 = vld [vmem:[%s2163_s2] sm:$0xff] }
   0x8   :  { %v174_v40 = vmul.f32 %v1703_v27, %v1703_v27  ;;  %v209_v41 = vsel %vm92_vm0, %v171_v31, 0.0  ;;  %v210_v42 = vsel %vm92_vm0, %v172_v32, 0.0  ;;  %v175_v43 = vmul.f32 %v1708_v28, %v1708_v28  ;;  %v1789_v25 = vld [vmem:[%s2163_s2 + $0x8] sm:$0xff]  ;;  %v1794_v29 = vld [vmem:[%s2163_s2 + $0x10] sm:$0xff] }
   0x9   :  { %v189_v44 = vadd.f32 %v188_v23, %v187_v33  ;;  %v200_v45 = vadd.f32 %v199_v30, %v198_v34  ;;  %v211_v46 = vadd.f32 %v210_v42, %v209_v41  ;;  %v212_v47 = vsel %vm92_vm0, %v173_v36, 0.0  ;;  %v1799_v30 = vld [vmem:[%s2163_s2 + $0x18] sm:$0xff] }
   0xa   :  { %v214_v49 = vsel %vm92_vm0, %v174_v40, 0.0  ;;  %v176_v50 = vmul.f32 %v1722_v37, %v1722_v37  ;;  %v177_v51 = vmul.f32 %v1727_v38, %v1727_v38  ;;  %v178_v52 = vmul.f32 %v1732_v39, %v1732_v39 }
   0xb   :  { %v190_v53 = vrot.slane %v189_v44, 4  ;;  %v202_v54 = vadd.f32 %v201_v35, %v200_v45  ;;  %v213_v55 = vadd.f32 %v212_v47, %v211_v46  ;;  %v222_v56 = vsel %vm92_vm0, %v175_v43, 0.0 }
   0xc   :  { %v223_v60 = vsel %vm92_vm0, %v176_v50, 0.0  ;;  %v225_v61 = vsel %vm92_vm0, %v177_v51, 0.0  ;;  %v227_v62 = vsel %vm92_vm0, %v178_v52, 0.0  ;;  %v179_v63 = vmul.f32 %v1744_v48, %v1744_v48 }
   0xd   :  { %v191_v5 = vadd.f32 %v190_v53, %v189_v44  ;;  %v203_v6 = vrot.slane %v202_v54, 4  ;;  %v215_v7 = vadd.f32 %v214_v49, %v213_v55  ;;  %v224_v10 = vadd.f32 %v223_v60, %v222_v56 }
   0xe   :  { %v180_v14 = vmul.f32 %v1757_v57, %v1757_v57  ;;  %v181_v16 = vmul.f32 %v1762_v58, %v1762_v58  ;;  %v182_v17 = vmul.f32 %v1767_v59, %v1767_v59  ;;  %v235_v18 = vsel %vm92_vm0, %v179_v63, 0.0 }
   0xf   :  { %v192_v19 = vrot.slane %v191_v5, 2  ;;  %v204_v22 = vadd.f32 %v203_v6, %v202_v54  ;;  %v216_v23 = vrot.slane %v215_v7, 4  ;;  %v226_v24 = vadd.f32 %v225_v61, %v224_v10 }
  0x10   :  { %v236_v31 = vsel %vm92_vm0, %v180_v14, 0.0  ;;  %v238_v32 = vsel %vm92_vm0, %v181_v16, 0.0  ;;  %v240_v33 = vsel %vm92_vm0, %v182_v17, 0.0  ;;  %v72_v34 = vmul.f32 %v1777_v13, %v1777_v13 }
  0x11   :  { %v193_v35 = vadd.f32 %v192_v19, %v191_v5  ;;  %v205_v36 = vrot.slane %v204_v22, 2  ;;  %v217_v40 = vadd.f32 %v216_v23, %v215_v7  ;;  %v228_v41 = vadd.f32 %v227_v62, %v226_v24 }
  0x12   :  { %10 = vsyncpa [#allocation3], 0  ;;  %v237_v42 = vadd.f32 %v236_v31, %v235_v18  ;;  %v73_v43 = vmul.f32 %v1789_v25, %v1789_v25  ;;  %v74_v44 = vmul.f32 %v1794_v29, %v1794_v29  ;;  %v75_v45 = vmul.f32 %v1799_v30, %v1799_v30  ;;  %v1815_v51 = vld [vmem:[%s2163_s2 + $0x20] sm:$0xff]  ;;  %v1823_v63 = vld [vmem:[%s2163_s2 + $0x28] sm:$0xff]  ;;  %s1587_s16 = smov [#allocation2]  }
  0x13   :  { %v194_v46 = vrot.slane %v193_v35, 1  ;;  %v206_v47 = vadd.f32 %v205_v36, %v204_v22  ;;  %v218_v49 = vrot.slane %v217_v40, 2  ;;  %v229_v50 = vrot.slane %v228_v41, 4  ;;  %v1828_v5 = vld [vmem:[%s2163_s2 + $0x30] sm:$0xff]  ;;  %v1834_v14 = vld [vmem:[%s2163_s2 + $0x38] sm:$0xff]  ;;  %s1234_s17 = sshll.u32 %s1587_s16, 4  ;;  %s1235_s17 = int_to_ptr.vmem [resolvable:$true] %s1234_s17 }
  0x14   :  { %v239_v52 = vadd.f32 %v238_v32, %v237_v42  ;;  %v93_v53 = vsel %vm92_vm0, %v72_v34, 0.0  ;;  %v94_v54 = vsel %vm92_vm0, %v73_v43, 0.0  ;;  %v96_v55 = vsel %vm92_vm0, %v74_v44, 0.0  ;;  %v1854_v43 = vld [vmem:[%s2163_s2 + $0x48] sm:$0xff]  ;;  %v1859_v44 = vld [vmem:[%s2163_s2 + $0x50] sm:$0xff]  ;;  %s1560_s19 = scalar_lea.vmem %s1235_s17, 16  ;;  %p1565_p1 = scmp.lt.s32.totalorder %s1235_s17, %s1235_s17 }
  0x15   :  { %v195_v56 = vadd.f32 %v194_v46, %v193_v35  ;;  %v207_v60 = vrot.slane %v206_v47, 1  ;;  %v219_v61 = vadd.f32 %v218_v49, %v217_v40  ;;  %v230_v62 = vadd.f32 %v229_v50, %v228_v41  ;;  %v1847_v35 = vld [vmem:[%s2163_s2 + $0x40] sm:$0xff]  ;;  %v1865_v49 = vld [vmem:[%s2163_s2 + $0x58] sm:$0xff]  ;;  %p1561_p0 = scmp.ne.s32.totalorder %s1235_s17, %s1560_s19  ;;  %s1564_s20 = scalar_lea.vmem %s1235_s17, 32 }
  0x16   :  { %v241_v6 = vadd.f32 %v240_v33, %v239_v52  ;;  %v95_v7 = vadd.f32 %v94_v54, %v93_v53  ;;  %v98_v10 = vsel %vm92_vm0, %v75_v45, 0.0  ;;  %v76_v16 = vmul.f32 %v1815_v51, %v1815_v51  ;;  %p1566_p2 = scmp.lt.s32.totalorder %s1564_s20, %s1560_s19 }
  0x17   :  { %1480 = vrsqrt.f32 %v195_v56  ;;  %v208_v17 = vadd.f32 %v207_v60, %v206_v47  ;;  %v220_v18 = vrot.slane %v219_v61, 1  ;;  %v231_v19 = vrot.slane %v230_v62, 2 }
  0x18   :  { %v242_v22 = vrot.slane %v241_v6, 4  ;;  %v97_v23 = vadd.f32 %v96_v55, %v95_v7  ;;  %v77_v24 = vmul.f32 %v1823_v63, %v1823_v63  ;;  %v78_v31 = vmul.f32 %v1828_v5, %v1828_v5  ;;  %p1567_p3 = por %p1566_p2, %p1565_p1 }
  0x19   :  { %1482 = vrsqrt.f32 %v208_v17  ;;  %v221_v32 = vadd.f32 %v220_v18, %v219_v61  ;;  %v232_v33 = vadd.f32 %v231_v19, %v230_v62  ;;  %v79_v34 = vmul.f32 %v1834_v14, %v1834_v14  ;;  %v1885_v17 = vld [vmem:[%s2163_s2 + $0x68] sm:$0xff] }
  0x1a   :  { %v243_v36 = vadd.f32 %v242_v22, %v241_v6  ;;  %v99_v40 = vadd.f32 %v98_v10, %v97_v23  ;;  %v106_v41 = vsel %vm92_vm0, %v76_v16, 0.0  ;;  %v107_v42 = vsel %vm92_vm0, %v77_v24, 0.0  ;;  %v1880_v16 = vld [vmem:[%s2163_s2 + $0x60] sm:$0xff]  ;;  %p1568_p4 = pnand %p1567_p3, %p1561_p0 }
  0x1b   :  { %1484 = vrsqrt.f32 %v221_v32  ;;  %v233_v45 = vrot.slane %v232_v33, 1  ;;  %v108_v46 = vadd.f32 %v107_v42, %v106_v41  ;;  %v109_v47 = vsel %vm92_vm0, %v78_v31, 0.0 }
  0x1c   :  { %v244_v50 = vrot.slane %v243_v36, 2  ;;  %v100_v52 = vrot.slane %v99_v40, 4  ;;  %v111_v53 = vsel %vm92_vm0, %v79_v34, 0.0  ;;  %v80_v54 = vmul.f32 %v1847_v35, %v1847_v35 }
  0x1d   :  { %v234_v55 = vadd.f32 %v233_v45, %v232_v33  ;;  %v110_v56 = vadd.f32 %v109_v47, %v108_v46  ;;  %v81_v60 = vmul.f32 %v1854_v43, %v1854_v43  ;;  %v82_v61 = vmul.f32 %v1859_v44, %v1859_v44 }
  0x1e   :  { %v245_v62 = vadd.f32 %v244_v50, %v243_v36  ;;  %v101_v6 = vadd.f32 %v100_v52, %v99_v40  ;;  %v83_v7 = vmul.f32 %v1865_v49, %v1865_v49  ;;  %v119_v10 = vsel %vm92_vm0, %v80_v54, 0.0 }
  0x1f   :  { %1486 = vrsqrt.f32 %v234_v55  ;;  %v112_v18 = vadd.f32 %v111_v53, %v110_v56  ;;  %v120_v19 = vsel %vm92_vm0, %v81_v60, 0.0  ;;  %v122_v31 = vsel %vm92_vm0, %v82_v61, 0.0 }
  0x20   :  { %v246_v22 = vrot.slane %v245_v62, 1  ;;  %v102_v23 = vrot.slane %v101_v6, 2  ;;  %v121_v24 = vadd.f32 %v120_v19, %v119_v10  ;;  %v124_v34 = vsel %vm92_vm0, %v83_v7, 0.0 }
  0x21   :  { %v1481_v32 = vpop.eup %1480  ;;  %v113_v33 = vrot.slane %v112_v18, 4  ;;  %v84_v36 = vmul.f32 %v1880_v16, %v1880_v16  ;;  %v85_v40 = vmul.f32 %v1885_v17, %v1885_v17  ;;  %vm293_vm2 = vcmask 261120  }
  0x22   :  { %v273_v41 = vmul.f32 %v1481_v32, %v1621_v0  ;;  %v274_v42 = vmul.f32 %v1481_v32, %v1626_v1  ;;  %v275_v45 = vmul.f32 %v1481_v32, %v1631_v2  ;;  %v276_v46 = vmul.f32 %v1481_v32, %v1638_v4  ;;  %v1903_v0 = vld [vmem:[%s2163_s2 + $0x70] sm:$0xff]  ;;  %v1931_v32 = vld [vmem:[%s2163_s2 + $0x80] sm:$0xff] }
  0x23   :  { %v1483_v47 = vpop.eup %1482  ;;  %v247_v50 = vadd.f32 %v246_v22, %v245_v62  ;;  %v103_v52 = vadd.f32 %v102_v23, %v101_v6  ;;  %v114_v53 = vadd.f32 %v113_v33, %v112_v18  ;;  %v123_v54 = vadd.f32 %v122_v31, %v121_v24  ;;  %v1910_v6 = vld [vmem:[%s2163_s2 + $0x78] sm:$0xff]  ;;  %v21_v33 = vld [vmem:[%s2161_s0] sm:$0xff] }
  0x24   :  { %v1413_v55 = vpack.c.bf16 %v274_v42, %v273_v41  ;;  %v277_v56 = vmul.f32 %v1483_v47, %v1649_v8  ;;  %v278_v60 = vmul.f32 %v1483_v47, %v1654_v9  ;;  %v1416_v61 = vpack.c.bf16 %v276_v46, %v275_v45 }
  0x25   :  { %v1485_v1 = vpop.eup %1484  ;;  %v279_v2 = vmul.f32 %v1483_v47, %v1661_v11  ;;  %v280_v4 = vmul.f32 %v1483_v47, %v1666_v12  ;;  %1488 = vrsqrt.f32 %v247_v50  ;;  %v104_v62 = vrot.slane %v103_v52, 1  ;;  %v1946_v50 = vld [vmem:[%s2163_s2 + $0x88] sm:$0xff] }
  0x26   :  { %1414 = vmatpush3.bf16.msra.mxu0 %v1413_v55  ;;  %v1419_v8 = vpack.c.bf16 %v278_v60, %v277_v56  ;;  %v281_v9 = vmul.f32 %v1485_v1, %v1684_v20  ;;  %v282_v7 = vmul.f32 %v1485_v1, %v1689_v21  ;;  %v1915_v10 = vmul.f32 %v1485_v1, %v1698_v26 }
  0x27   :  { %1415 = vmatprep.subr.bf16.mxu0 %v1584_v3  ;;  %v1919_v11 = vmul.f32 %v1485_v1, %v1703_v27  ;;  %v105_v12 = vadd.f32 %v104_v62, %v103_v52  ;;  %v115_v18 = vrot.slane %v114_v53, 2  ;;  %v86_v19 = vmul.f32 %v1903_v0, %v1903_v0 }
  0x28   :  { %1420 = vmatpush3.bf16.msra.mxu1 %v1419_v8  ;;  %v1422_v22 = vpack.c.bf16 %v280_v4, %v279_v2  ;;  %v125_v23 = vadd.f32 %v124_v34, %v123_v54  ;;  %v87_v20 = vmul.f32 %v1910_v6, %v1910_v6  ;;  %v132_v21 = vsel %vm92_vm0, %v84_v36, 0.0 }
  0x29   :  { %v1487_v26 = vpop.eup %1486  ;;  %1421 = vmatprep.subr.bf16.mxu1 %v1584_v3  ;;  %v1425_v24 = vpack.c.bf16 %v282_v7, %v281_v9  ;;  %1490 = vrsqrt.f32 %v105_v12  ;;  %v116_v27 = vadd.f32 %v115_v18, %v114_v53  ;;  %v133_v31 = vsel %vm92_vm0, %v85_v40, 0.0 }
  0x2a   :  { %1417 = vmatpush3.bf16.msra.mxu0 %v1416_v61  ;;  %v285_v34 = vmul.f32 %v1487_v26, %v1708_v28  ;;  %v286_v36 = vmul.f32 %v1487_v26, %v1722_v37  ;;  %v1428_v41 = vpack.c.bf16 %v1919_v11, %v1915_v10  ;;  %v287_v42 = vmul.f32 %v1487_v26, %v1727_v38  ;;  %v1951_v28 = vld [vmem:[%s2163_s2 + $0x90] sm:$0xff]  ;;  %v1956_v37 = vld [vmem:[%s2163_s2 + $0x98] sm:$0xff]  ;;  %v22_v38 = vld [vmem:[%s2161_s0 + $0x8] sm:$0xff] }
  0x2b   :  { %1424 = vmatprep.subr.bf16.mxu0 %v1584_v3  ;;  %v117_v40 = vrot.slane %v116_v27, 1  ;;  %v126_v45 = vrot.slane %v125_v23, 4  ;;  %v134_v46 = vadd.f32 %v133_v31, %v132_v21  ;;  %v135_v47 = vsel %vm92_vm0, %v86_v19, 0.0 }
  0x2c   :  { %1423 = vmatpush3.bf16.msra.mxu1 %v1422_v22  ;;  %v1431_v52 = vpack.c.bf16 %v286_v36, %v285_v34  ;;  %v288_v53 = vmul.f32 %v1487_v26, %v1732_v39  ;;  %v137_v54 = vsel %vm92_vm0, %v87_v20, 0.0  ;;  %v88_v55 = vmul.f32 %v1931_v32, %v1931_v32  ;;  %v23_v20 = vld [vmem:[%s2161_s0 + $0x10] sm:$0xff] }
  0x2d   :  { %1311 = vmatmul.mubr.msk.f32.vlgmr.msra.gmra.mrb[0].mxu0 %vm293_vm2, %v21_v33  ;;  %1430 = vmatprep.subr.bf16.mxu1 %v1584_v3  ;;  %v118_v56 = vadd.f32 %v117_v40, %v116_v27  ;;  %v127_v60 = vadd.f32 %v126_v45, %v125_v23  ;;  %v136_v61 = vadd.f32 %v135_v47, %v134_v46  ;;  %v24_v33 = vld [vmem:[%s2161_s0 + $0x18] sm:$0xff]  ;;  %vm1226_vm3 = vcmask 0  }
  0x2e   :  { %1426 = vmatpush3.bf16.msra.mxu0 %v1425_v24  ;;  %1332 = vmatprep.mubr.msk.f32.mxu0 %vm1585_vm1, %v1586_v15  ;;  %v89_v1 = vmul.f32 %v1946_v50, %v1946_v50  ;;  %v90_v39 = vmul.f32 %v1951_v28, %v1951_v28  ;;  %v91_v2 = vmul.f32 %v1956_v37, %v1956_v37  ;;  %v145_v4 = vsel %vm92_vm0, %v88_v55, 0.0 }
  0x2f   :  { %v1489_v62 = vpop.eup %1488  ;;  %1322 = vmatmul.mubr.msk.f32.vlgmr.msra.gmra.mrb[0].mxu1 %vm293_vm2, %v22_v38  ;;  %1427 = vmatprep.subr.bf16.mxu0 %v1584_v3  ;;  %1492 = vrsqrt.f32 %v118_v56  ;;  %v128_v8 = vrot.slane %v127_v60, 2  ;;  %v138_v9 = vadd.f32 %v137_v54, %v136_v61  ;;  %v1434_v7 = vpack.c.bf16 %v288_v53, %v287_v42  ;;  %v25_v53 = vld [vmem:[%s2161_s0 + $0x20] sm:$0xff] }
  0x30   :  { %1432 = vmatpush3.bf16.msra.mxu1 %v1431_v52  ;;  %1343 = vmatprep.mubr.msk.f32.mxu1 %vm1585_vm1, %v1586_v15  ;;  %v289_v10 = vmul.f32 %v1489_v62, %v1744_v48  ;;  %v290_v11 = vmul.f32 %v1489_v62, %v1757_v57  ;;  %v146_v12 = vsel %vm92_vm0, %v89_v1, 0.0  ;;  %v291_v18 = vmul.f32 %v1489_v62, %v1762_v58 }
  0x31   :  { %1433 = vmatprep.subr.bf16.mxu1 %v1584_v3  ;;  %v129_v19 = vadd.f32 %v128_v8, %v127_v60  ;;  %v139_v22 = vrot.slane %v138_v9, 4  ;;  %v147_v23 = vadd.f32 %v146_v12, %v145_v4  ;;  %v292_v26 = vmul.f32 %v1489_v62, %v1767_v59 }
  0x32   :  { %1429 = vmatpush3.bf16.msra.mxu0 %v1428_v41  ;;  %v1437_v21 = vpack.c.bf16 %v290_v11, %v289_v10  ;;  %v148_v48 = vsel %vm92_vm0, %v90_v39, 0.0  ;;  %v150_v57 = vsel %vm92_vm0, %v91_v2, 0.0  ;;  %v26_v39 = vld [vmem:[%s2162_s1] sm:$0xff] }
  0x33   :  { %v1491_v24 = vpop.eup %1490  ;;  %1436 = vmatprep.subr.bf16.mxu0 %v1584_v3  ;;  %v130_v27 = vrot.slane %v129_v19, 1  ;;  %v140_v58 = vadd.f32 %v139_v22, %v138_v9  ;;  %v149_v31 = vadd.f32 %v148_v48, %v147_v23  ;;  %v1440_v47 = vpack.c.bf16 %v292_v26, %v291_v18  ;;  %v27_v9 = vld [vmem:[%s2162_s1 + $0x8] sm:$0xff]  ;;  %v28_v22 = vld [vmem:[%s2162_s1 + $0x10] sm:$0xff]  ;;  %v29_v26 = vld [vmem:[%s2162_s1 + $0x18] sm:$0xff] }
  0x34   :  { %1435 = vmatpush3.bf16.msra.mxu1 %v1434_v7  ;;  %v253_v34 = vmul.f32 %v1491_v24, %v1777_v13  ;;  %v254_v36 = vmul.f32 %v1491_v24, %v1789_v25  ;;  %v255_v59 = vmul.f32 %v1491_v24, %v1794_v29  ;;  %v256_v41 = vmul.f32 %v1491_v24, %v1799_v30 }
  0x35   :  { %1333 = vmatmul.mubr.msk.f32.vlgmr.msra.gmra.mrb[2].mxu0 %vm293_vm2, %v23_v20  ;;  %1442 = vmatprep.subr.bf16.mxu1 %v1584_v3  ;;  %v131_v42 = vadd.f32 %v130_v27, %v129_v19  ;;  %v141_v40 = vrot.slane %v140_v58, 2  ;;  %v151_v45 = vadd.f32 %v150_v57, %v149_v31 }
  0x36   :  { %1438 = vmatpush3.bf16.msra.mxu0 %v1437_v21  ;;  %v1443_v46 = vpack.c.bf16 %v254_v36, %v253_v34  ;;  %1354 = vmatprep.mubr.msk.f32.mxu0 %vm1585_vm1, %v1586_v15  ;;  %v1446_v29 = vpack.c.bf16 %v256_v41, %v255_v59 }
  0x37   :  { %1344 = vmatmul.mubr.msk.f32.vlgmr.msra.gmra.mrb[2].mxu1 %vm293_vm2, %v24_v33  ;;  %1439 = vmatprep.subr.bf16.mxu0 %v1584_v3  ;;  %1494 = vrsqrt.f32 %v131_v42  ;;  %v142_v13 = vadd.f32 %v141_v40, %v140_v58  ;;  %v152_v25 = vrot.slane %v151_v45, 4 }
  0x38   :  { %1444 = vmatpush3.bf16.msra.mxu1 %v1443_v46  ;;  %1365 = vmatprep.mubr.msk.f32.mxu1 %vm1585_vm1, %v1586_v15 }
  0x39   :  { %v1493_v30 = vpop.eup %1492  ;;  %1445 = vmatprep.subr.bf16.mxu1 %v1584_v3  ;;  %v143_v38 = vrot.slane %v142_v13, 1  ;;  %v153_v52 = vadd.f32 %v152_v25, %v151_v45 }
  0x3a   :  { %1441 = vmatpush3.bf16.msra.mxu0 %v1440_v47  ;;  %v257_v54 = vmul.f32 %v1493_v30, %v1815_v51  ;;  %v258_v55 = vmul.f32 %v1493_v30, %v1823_v63  ;;  %v259_v56 = vmul.f32 %v1493_v30, %v1828_v5  ;;  %v260_v60 = vmul.f32 %v1493_v30, %v1834_v14 }
  0x3b   :  { %1448 = vmatprep.subr.bf16.mxu0 %v1584_v3  ;;  %v144_v61 = vadd.f32 %v143_v38, %v142_v13  ;;  %v154_v1 = vrot.slane %v153_v52, 2 }
  0x3c   :  { %1447 = vmatpush3.bf16.msra.mxu1 %v1446_v29  ;;  %v1449_v2 = vpack.c.bf16 %v258_v55, %v257_v54  ;;  %v1452_v63 = vpack.c.bf16 %v260_v60, %v259_v56 }
  0x3d   :  { %1355 = vmatmul.mubr.msk.f32.vlgmr.msra.gmra.mrb[4].mxu0 %vm293_vm2, %v25_v53  ;;  %1454 = vmatprep.subr.bf16.mxu1 %v1584_v3  ;;  %1496 = vrsqrt.f32 %v144_v61  ;;  %v155_v51 = vadd.f32 %v154_v1, %v153_v52 }
  0x3e   :  { %1450 = vmatpush3.bf16.msra.mxu0 %v1449_v2  ;;  %1376 = vmatprep.mubr.msk.f32.mxu0 %vm1585_vm1, %v1586_v15 }
  0x3f   :  { %1366 = vmatmul.mubr.msk.f32.vlgmr.msra.gmra.mrb[4].mxu1 %vm293_vm2, %v26_v39  ;;  %1451 = vmatprep.subr.bf16.mxu0 %v1584_v3  ;;  %v156_v5 = vrot.slane %v155_v51, 1 }
  0x40   :  { %1387 = vmatprep.mubr.msk.f32.mxu1 %vm1585_vm1, %v1586_v15 }
  0x41   :  { %v1495_v14 = vpop.eup %1494  ;;  %v157_v4 = vadd.f32 %v156_v5, %v155_v51 }
  0x42   :  { %v261_v62 = vmul.f32 %v1495_v14, %v1847_v35  ;;  %v262_v8 = vmul.f32 %v1495_v14, %v1854_v43  ;;  %1453 = vmatpush3.bf16.msra.mxu0 %v1452_v63  ;;  %v263_v7 = vmul.f32 %v1495_v14, %v1859_v44  ;;  %v264_v10 = vmul.f32 %v1495_v14, %v1865_v49 }
  0x43   :  { %1460 = vmatprep.subr.bf16.mxu0 %v1584_v3  ;;  %1498 = vrsqrt.f32 %v157_v4 }
  0x44   :  { %v1455_v11 = vpack.c.bf16 %v262_v8, %v261_v62  ;;  %v1458_v12 = vpack.c.bf16 %v264_v10, %v263_v7 }
  0x45   :  { %1377 = vmatmul.mubr.msk.f32.vlgmr.msra.gmra.mrb[6].mxu0 %vm293_vm2, %v27_v9 }
  0x46   :  { %1456 = vmatpush3.bf16.msra.mxu1 %v1455_v11  ;;  %1398 = vmatprep.mubr.msk.f32.mxu0 %vm1585_vm1, %v1586_v15 }
  0x47   :  { %v1497_v35 = vpop.eup %1496  ;;  %1457 = vmatprep.subr.bf16.mxu1 %v1584_v3 }
  0x48   :  { %v265_v43 = vmul.f32 %v1497_v35, %v1880_v16  ;;  %v266_v44 = vmul.f32 %v1497_v35, %v1885_v17  ;;  %v267_v49 = vmul.f32 %v1497_v35, %v1903_v0  ;;  %v268_v18 = vmul.f32 %v1497_v35, %v1910_v6 }
  0x4a   :  { %1459 = vmatpush3.bf16.msra.mxu1 %v1458_v12  ;;  %v1461_v19 = vpack.c.bf16 %v266_v44, %v265_v43  ;;  %v1464_v23 = vpack.c.bf16 %v268_v18, %v267_v49 }
  0x4b   :  { %1466 = vmatprep.subr.bf16.mxu1 %v1584_v3 }
  0x4c   :  { %1462 = vmatpush3.bf16.msra.mxu0 %v1461_v19 }
  0x4d   :  { %v1499_v20 = vpop.eup %1498  ;;  %1388 = vmatmul.mubr.msk.f32.vlgmr.msra.gmra.mrb[6].mxu1 %vm293_vm2, %v28_v22  ;;  %1463 = vmatprep.subr.bf16.mxu0 %v1584_v3 }
  0x4e   :  { %v269_v16 = vmul.f32 %v1499_v20, %v1931_v32  ;;  %v270_v17 = vmul.f32 %v1499_v20, %v1946_v50  ;;  %v271_v0 = vmul.f32 %v1499_v20, %v1951_v28  ;;  %v272_v6 = vmul.f32 %v1499_v20, %v1956_v37  ;;  %1409 = vmatprep.mubr.msk.f32.mxu1 %vm1585_vm1, %v1586_v15  ;;  %v30_v32 = vld [vmem:[%s2162_s1 + $0x20] sm:$0xff] }
  0x50   :  { %v1467_v21 = vpack.c.bf16 %v270_v17, %v269_v16  ;;  %1465 = vmatpush3.bf16.msra.mxu0 %v1464_v23  ;;  %v1470_v48 = vpack.c.bf16 %v272_v6, %v271_v0 }
  0x52   :  { %1468 = vmatpush3.bf16.msra.mxu1 %v1467_v21 }
  0x53   :  { %1469 = vmatprep.subr.bf16.mxu1 %v1584_v3  ;;  %1399 = vmatmul.mubr.msk.f32.vlgmr.msra.gmra.mrb[8].mxu0 %vm293_vm2, %v29_v26 }
  0x56   :  { %1471 = vmatpush3.bf16.msra.mxu1 %v1470_v48 }
  0x59   :  { %1410 = vmatmul.mubr.msk.f32.vlgmr.msra.gmra.mrb[8].mxu1 %vm293_vm2, %v30_v32 }
 0x100   :  { %v363_v15 = vpop.f32.mrb[0].mxu0 }
 0x101   :  { %v1312_v50 = vpop.f32.mrb[1].mxu0  ;;  %v1024_v28 = vsel %vm92_vm0, %v363_v15, -inf }
 0x102   :  { %1025 = vmax.xlane.f32.xlu0 %v1024_v28  ;;  %v436_v37 = vpop.f32.mrb[0].mxu1 }
 0x103   :  { %v1323_v57 = vpop.f32.mrb[1].mxu1  ;;  %v1027_v24 = vsel %vm92_vm0, %v436_v37, -inf }
 0x106   :  { %1028 = vmax.xlane.f32.xlu0 %v1027_v24 }
 0x108   :  { %v509_v3 = vpop.f32.mrb[2].mxu0 }
 0x109   :  { %v1334_v27 = vpop.f32.mrb[3].mxu0  ;;  %v1030_v58 = vsel %vm92_vm0, %v509_v3, -inf }
 0x10a   :  { %1031 = vmax.xlane.f32.xlu0 %v1030_v58  ;;  %v582_v31 = vpop.f32.mrb[2].mxu1 }
 0x10b   :  { %v1345_v33 = vpop.f32.mrb[3].mxu1  ;;  %v1033_v34 = vsel %vm92_vm0, %v582_v31, -inf }
 0x10e   :  { %1034 = vmax.xlane.f32.xlu0 %v1033_v34 }
 0x110   :  { %v655_v36 = vpop.f32.mrb[4].mxu0 }
 0x111   :  { %v1356_v59 = vpop.f32.mrb[5].mxu0  ;;  %v1036_v41 = vsel %vm92_vm0, %v655_v36, -inf }
 0x112   :  { %v728_v42 = vpop.f32.mrb[4].mxu1  ;;  %1037 = vmax.xlane.f32.xlu0 %v1036_v41 }
 0x113   :  { %v1122_v40 = vsel %vm92_vm0, %v728_v42, -inf  ;;  %v1367_v45 = vpop.f32.mrb[5].mxu1 }
 0x114   :  { %1123 = vmax.xlane.f32.xlu1 %v1122_v40 }
 0x118   :  { %v801_v46 = vpop.f32.mrb[6].mxu0 }
 0x119   :  { %v1378_v47 = vpop.f32.mrb[7].mxu0  ;;  %v1125_v13 = vsel %vm92_vm0, %v801_v46, -inf }
 0x11a   :  { %1126 = vmax.xlane.f32.xlu1 %v1125_v13 }
 0x120   :  { %v874_v25 = vpop.f32.mrb[6].mxu1 }
 0x121   :  { %v1389_v29 = vpop.f32.mrb[7].mxu1  ;;  %v1128_v30 = vsel %vm92_vm0, %v874_v25, -inf }
 0x122   :  { %1129 = vmax.xlane.f32.xlu1 %v1128_v30 }
 0x126   :  { %v947_v38 = vpop.f32.mrb[8].mxu0 }
 0x127   :  { %v1400_v52 = vpop.f32.mrb[9].mxu0  ;;  %v1131_v53 = vsel %vm92_vm0, %v947_v38, -inf }
 0x128   :  { %1132 = vmax.xlane.f32.xlu1 %v1131_v53 }
 0x12c   :  { %v1020_v54 = vpop.f32.mrb[8].mxu1 }
 0x12d   :  { %v1411_v55 = vpop.f32.mrb[9].mxu1  ;;  %v1134_v56 = vsel %vm92_vm0, %v1020_v54, -inf }
 0x12e   :  { %1135 = vmax.xlane.f32.xlu1 %v1134_v56 }
 0x18f   :  { %v1026_v60 = vpop.xlane.xlu0 %1025 }
 0x190   :  { %v2074_v61 = vsub.f32 %v363_v15, %v1026_v60 }
 0x192   :  { %v1044_v1 = vmul.f32 1.442695, %v2074_v61 }
 0x193   :  { %v1029_v39 = vpop.xlane.xlu0 %1028 }
 0x194   :  { %1500 = vpow2.f32 %v1044_v1  ;;  %v2077_v2 = vsub.f32 %v436_v37, %v1029_v39 }
 0x196   :  { %v1046_v51 = vmul.f32 1.442695, %v2077_v2 }
 0x197   :  { %v1032_v63 = vpop.xlane.xlu0 %1031 }
 0x198   :  { %1502 = vpow2.f32 %v1046_v51  ;;  %v2080_v5 = vsub.f32 %v509_v3, %v1032_v63 }
 0x19a   :  { %v1048_v14 = vmul.f32 1.442695, %v2080_v5 }
 0x19b   :  { %v1035_v4 = vpop.xlane.xlu0 %1034 }
 0x19c   :  { %1504 = vpow2.f32 %v1048_v14  ;;  %v2084_v9 = vsub.f32 %v582_v31, %v1035_v4 }
 0x19e   :  { %v1501_v62 = vpop.eup %1500  ;;  %v1050_v44 = vmul.f32 1.442695, %v2084_v9 }
 0x19f   :  { %v1054_v8 = vsel %vm92_vm0, %v1501_v62, 0.0  ;;  %v1038_v7 = vpop.xlane.xlu0 %1037 }
 0x1a0   :  { %1055 = vadd.xlane.f32.xlu0 %v1054_v8  ;;  %v2088_v35 = vsub.f32 %v655_v36, %v1038_v7 }
 0x1a1   :  { %v1124_v10 = vpop.xlane.xlu1 %1123 }
 0x1a2   :  { %v1503_v11 = vpop.eup %1502  ;;  %v2086_v12 = vsub.f32 %v728_v42, %v1124_v10  ;;  %v1052_v19 = vmul.f32 1.442695, %v2088_v35 }
 0x1a3   :  { %v1057_v43 = vsel %vm92_vm0, %v1503_v11, 0.0 }
 0x1a4   :  { %v1142_v49 = vmul.f32 1.442695, %v2086_v12  ;;  %1058 = vadd.xlane.f32.xlu1 %v1057_v43 }
 0x1a6   :  { %v1505_v18 = vpop.eup %1504  ;;  %1506 = vpow2.f32 %v1142_v49 }
 0x1a7   :  { %v1127_v22 = vpop.xlane.xlu1 %1126  ;;  %v1060_v23 = vsel %vm92_vm0, %v1505_v18, 0.0  ;;  %1508 = vpow2.f32 %v1050_v44 }
 0x1a8   :  { %v2095_v20 = vsub.f32 %v801_v46, %v1127_v22  ;;  %1061 = vadd.xlane.f32.xlu0 %v1060_v23  ;;  %1510 = vpow2.f32 %v1052_v19  ;;  %v2122_v22 = vld [vmem:[%s2165_s4] sm:$0xff] }
 0x1aa   :  { %v1144_v16 = vmul.f32 1.442695, %v2095_v20 }
 0x1ac   :  { %1512 = vpow2.f32 %v1144_v16 }
 0x1af   :  { %v1130_v17 = vpop.xlane.xlu1 %1129 }
 0x1b0   :  { %v1507_v0 = vpop.eup %1506  ;;  %v2098_v6 = vsub.f32 %v874_v25, %v1130_v17 }
 0x1b1   :  { %v1152_v21 = vsel %vm92_vm0, %v1507_v0, 0.0  ;;  %v1509_v26 = vpop.eup %1508 }
 0x1b2   :  { %v1146_v48 = vmul.f32 1.442695, %v2098_v6  ;;  %1153 = vadd.xlane.f32.xlu0 %v1152_v21  ;;  %v1511_v32 = vpop.eup %1510  ;;  %v1063_v50 = vsel %vm92_vm0, %v1509_v26, 0.0 }
 0x1b3   :  { %v1066_v3 = vsel %vm92_vm0, %v1511_v32, 0.0 }
 0x1b4   :  { %1514 = vpow2.f32 %v1146_v48 }
 0x1b5   :  { %v1133_v15 = vpop.xlane.xlu1 %1132 }
 0x1b6   :  { %v1513_v28 = vpop.eup %1512  ;;  %v2103_v37 = vsub.f32 %v947_v38, %v1133_v15  ;;  %1064 = vadd.xlane.f32.xlu0 %v1063_v50 }
 0x1b7   :  { %v1155_v57 = vsel %vm92_vm0, %v1513_v28, 0.0 }
 0x1b8   :  { %v1148_v24 = vmul.f32 1.442695, %v2103_v37  ;;  %1156 = vadd.xlane.f32.xlu1 %v1155_v57 }
 0x1ba   :  { %1516 = vpow2.f32 %v1148_v24  ;;  %1067 = vadd.xlane.f32.xlu0 %v1066_v3 }
 0x1bb   :  { %v1136_v27 = vpop.xlane.xlu1 %1135 }
 0x1bc   :  { %v2108_v58 = vsub.f32 %v1020_v54, %v1136_v27 }
 0x1be   :  { %v1515_v31 = vpop.eup %1514  ;;  %v1150_v33 = vmul.f32 1.442695, %v2108_v58 }
 0x1bf   :  { %v1158_v34 = vsel %vm92_vm0, %v1515_v31, 0.0 }
 0x1c0   :  { %1518 = vpow2.f32 %v1150_v33  ;;  %1159 = vadd.xlane.f32.xlu1 %v1158_v34 }
 0x1c4   :  { %v1517_v36 = vpop.eup %1516 }
 0x1c5   :  { %v1161_v59 = vsel %vm92_vm0, %v1517_v36, 0.0 }
 0x1c6   :  { %1162 = vadd.xlane.f32.xlu1 %v1161_v59 }
 0x1ca   :  { %v1519_v41 = vpop.eup %1518 }
 0x1cb   :  { %v1164_v42 = vsel %vm92_vm0, %v1519_v41, 0.0 }
 0x1cc   :  { %1165 = vadd.xlane.f32.xlu1 %v1164_v42 }
 0x22d   :  { %v1056_v40 = vpop.xlane.xlu0 %1055 }
 0x22e   :  { %1520 = vlog2.f32 %v1056_v40 }
 0x231   :  { %v1059_v45 = vpop.xlane.xlu1 %1058 }
 0x232   :  { %1522 = vlog2.f32 %v1059_v45 }
 0x235   :  { %v1062_v46 = vpop.xlane.xlu0 %1061 }
 0x236   :  { %1524 = vlog2.f32 %v1062_v46 }
 0x238   :  { %v1521_v47 = vpop.eup %1520 }
 0x239   :  { %v1070_v30 = vmul.f32 0.6931472, %v1521_v47 }
 0x23b   :  { %v1079_v54 = vsub.f32 %v2074_v61, %v1070_v30 }
 0x23c   :  { %v1523_v13 = vpop.eup %1522 }
 0x23d   :  { %v1072_v38 = vmul.f32 0.6931472, %v1523_v13  ;;  %v1084_v39 = vmul.f32 1.442695, %v1079_v54 }
 0x23f   :  { %v1154_v25 = vpop.xlane.xlu0 %1153  ;;  %v1080_v55 = vsub.f32 %v2077_v2, %v1072_v38 }
 0x240   :  { %v1525_v29 = vpop.eup %1524 }
 0x241   :  { %v1074_v52 = vmul.f32 0.6931472, %v1525_v29  ;;  %v1086_v51 = vmul.f32 1.442695, %v1080_v55  ;;  %v1095_v17 = vsub.f32 %v1080_v55, %v2122_v22 }
 0x243   :  { %v1065_v53 = vpop.xlane.xlu0 %1064  ;;  %v1081_v60 = vsub.f32 %v2080_v5, %v1074_v52 }
 0x244   :  { %1526 = vlog2.f32 %v1065_v53 }
 0x245   :  { %v1157_v56 = vpop.xlane.xlu1 %1156  ;;  %v1088_v63 = vmul.f32 1.442695, %v1081_v60  ;;  %v1096_v15 = vsub.f32 %v1081_v60, %v2122_v22 }
 0x246   :  { %1528 = vlog2.f32 %v1157_v56 }
 0x247   :  { %1530 = vlog2.f32 %v1154_v25  ;;  %v1068_v1 = vpop.xlane.xlu0 %1067 }
 0x248   :  { %1532 = vlog2.f32 %v1068_v1 }
 0x249   :  { %1534 = vpow2.f32 %v1084_v39 }
 0x24a   :  { %1536 = vpow2.f32 %v1086_v51 }
 0x24d   :  { %v1160_v14 = vpop.xlane.xlu1 %1159 }
 0x24e   :  { %v1527_v4 = vpop.eup %1526  ;;  %1538 = vlog2.f32 %v1160_v14 }
 0x24f   :  { %1540 = vpow2.f32 %v1088_v63  ;;  %v1076_v61 = vmul.f32 0.6931472, %v1527_v4 }
 0x250   :  { %v1529_v62 = vpop.eup %1528 }
 0x251   :  { %v1531_v8 = vpop.eup %1530  ;;  %v1082_v2 = vsub.f32 %v2084_v9, %v1076_v61  ;;  %v1170_v11 = vmul.f32 0.6931472, %v1529_v62 }
 0x252   :  { %v1533_v7 = vpop.eup %1532  ;;  %v1168_v44 = vmul.f32 0.6931472, %v1531_v8 }
 0x253   :  { %v1090_v10 = vmul.f32 1.442695, %v1082_v2  ;;  %v1078_v5 = vmul.f32 0.6931472, %v1533_v7  ;;  %v1163_v43 = vpop.xlane.xlu1 %1162  ;;  %v1535_v18 = vpop.eup %1534  ;;  %v1178_v9 = vsub.f32 %v2095_v20, %v1170_v11 }
 0x254   :  { %1542 = vlog2.f32 %v1163_v43  ;;  %v1537_v19 = vpop.eup %1536  ;;  %v1177_v0 = vsub.f32 %v2086_v12, %v1168_v44  ;;  %v1097_v12 = vsub.f32 %v1082_v2, %v2122_v22 }
 0x255   :  { %1544 = vpow2.f32 %v1090_v10  ;;  %v1083_v49 = vsub.f32 %v2088_v35, %v1078_v5  ;;  %v1094_v35 = vsub.f32 %v1079_v54, %v2122_v22  ;;  %v1100_v32 = vmul.f32 %v1537_v19, %v1095_v17 }
 0x256   :  { %v1184_v50 = vmul.f32 1.442695, %v1178_v9  ;;  %v1182_v20 = vmul.f32 1.442695, %v1177_v0  ;;  %v1193_v60 = vsub.f32 %v1178_v9, %v2122_v22  ;;  %v1192_v39 = vsub.f32 %v1177_v0, %v2122_v22 }
 0x257   :  { %v1092_v23 = vmul.f32 1.442695, %v1083_v49  ;;  %v1099_v57 = vmul.f32 %v1535_v18, %v1094_v35  ;;  %v1105_v31 = vsel %vm92_vm0, %v1100_v32, 0.0  ;;  %v1098_v40 = vsub.f32 %v1083_v49, %v2122_v22 }
 0x258   :  { %v1539_v16 = vpop.eup %1538 }
 0x259   :  { %v1541_v21 = vpop.eup %1540  ;;  %1546 = vpow2.f32 %v1092_v23  ;;  %v1172_v26 = vmul.f32 0.6931472, %v1539_v16  ;;  %v1166_v48 = vpop.xlane.xlu1 %1165  ;;  %v1104_v59 = vsel %vm92_vm0, %v1099_v57, 0.0 }
 0x25a   :  { %1548 = vlog2.f32 %v1166_v48  ;;  %v1101_v24 = vmul.f32 %v1541_v21, %v1096_v15  ;;  %v1106_v42 = vadd.f32 %v1105_v31, %v1104_v59 }
 0x25b   :  { %v1179_v28 = vsub.f32 %v2098_v6, %v1172_v26  ;;  %1550 = vpow2.f32 %v1184_v50 }
 0x25c   :  { %1552 = vpow2.f32 %v1182_v20  ;;  %v1107_v41 = vsel %vm92_vm0, %v1101_v24, 0.0 }
 0x25d   :  { %v1186_v3 = vmul.f32 1.442695, %v1179_v28  ;;  %v1108_v13 = vadd.f32 %v1107_v41, %v1106_v42  ;;  %v1194_v63 = vsub.f32 %v1179_v28, %v2122_v22 }
 0x25e   :  { %v1543_v27 = vpop.eup %1542 }
 0x25f   :  { %v1545_v33 = vpop.eup %1544  ;;  %v1174_v34 = vmul.f32 0.6931472, %v1543_v27  ;;  %1554 = vpow2.f32 %v1186_v3 }
 0x260   :  { %v1102_v36 = vmul.f32 %v1545_v33, %v1097_v12 }
 0x261   :  { %v1180_v6 = vsub.f32 %v2103_v37, %v1174_v34 }
 0x262   :  { %v1109_v45 = vsel %vm92_vm0, %v1102_v36, 0.0 }
 0x263   :  { %v1547_v46 = vpop.eup %1546  ;;  %v1188_v47 = vmul.f32 1.442695, %v1180_v6  ;;  %v1110_v38 = vadd.f32 %v1109_v45, %v1108_v13  ;;  %v1195_v4 = vsub.f32 %v1180_v6, %v2122_v22 }
 0x264   :  { %v1549_v25 = vpop.eup %1548  ;;  %v1103_v29 = vmul.f32 %v1547_v46, %v1098_v40 }
 0x265   :  { %1556 = vpow2.f32 %v1188_v47  ;;  %v1176_v30 = vmul.f32 0.6931472, %v1549_v25  ;;  %v1551_v55 = vpop.eup %1550 }
 0x266   :  { %v1111_v52 = vsel %vm92_vm0, %v1103_v29, 0.0  ;;  %v1553_v56 = vpop.eup %1552  ;;  %v1198_v51 = vmul.f32 %v1551_v55, %v1193_v60 }
 0x267   :  { %v1181_v53 = vsub.f32 %v2108_v58, %v1176_v30  ;;  %v1112_v54 = vadd.f32 %v1111_v52, %v1110_v38  ;;  %v1197_v14 = vmul.f32 %v1553_v56, %v1192_v39 }
 0x268   :  { %v1203_v8 = vsel %vm92_vm0, %v1198_v51, 0.0 }
 0x269   :  { %v1190_v37 = vmul.f32 1.442695, %v1181_v53  ;;  %1113 = vadd.xlane.f32.xlu0 %v1112_v54  ;;  %v1555_v1 = vpop.eup %1554  ;;  %v1202_v2 = vsel %vm92_vm0, %v1197_v14, 0.0  ;;  %v1196_v5 = vsub.f32 %v1181_v53, %v2122_v22 }
 0x26a   :  { %v1199_v61 = vmul.f32 %v1555_v1, %v1194_v63  ;;  %v1204_v10 = vadd.f32 %v1203_v8, %v1202_v2 }
 0x26b   :  { %1558 = vpow2.f32 %v1190_v37 }
 0x26c   :  { %v1205_v7 = vsel %vm92_vm0, %v1199_v61, 0.0 }
 0x26d   :  { %v1206_v44 = vadd.f32 %v1205_v7, %v1204_v10 }
 0x26f   :  { %v1557_v62 = vpop.eup %1556 }
 0x270   :  { %v1200_v58 = vmul.f32 %v1557_v62, %v1195_v4 }
 0x272   :  { %v1207_v11 = vsel %vm92_vm0, %v1200_v58, 0.0 }
 0x273   :  { %v1208_v18 = vadd.f32 %v1207_v11, %v1206_v44 }
 0x275   :  { %v1559_v43 = vpop.eup %1558 }
 0x276   :  { %v1201_v49 = vmul.f32 %v1559_v43, %v1196_v5 }
 0x278   :  { %v1209_v19 = vsel %vm92_vm0, %v1201_v49, 0.0 }
 0x279   :  { %v1210_v23 = vadd.f32 %v1209_v19, %v1208_v18 }
 0x27b   :  { %1211 = vadd.xlane.f32.xlu1 %v1210_v23 }
 0x2f6   :  { %v1114_v9 = vpop.xlane.xlu0 %1113 }
 0x2f7   :  { %v1115_v16 = vrot.slane %v1114_v9, 4 }
 0x2f9   :  { %v1116_v17 = vadd.f32 %v1115_v16, %v1114_v9 }
 0x2fb   :  { %v1117_v0 = vrot.slane %v1116_v17, 2 }
 0x2fd   :  { %v1118_v21 = vadd.f32 %v1117_v0, %v1116_v17 }
 0x2ff   :  { %v1119_v26 = vrot.slane %v1118_v21, 1 }
 0x301   :  { %v1120_v48 = vadd.f32 %v1119_v26, %v1118_v21 }
 0x303   :  { %1472 = vpush %v1120_v48 }
 0x308   :  { %v1212_v35 = vpop.xlane.xlu1 %1211 }
 0x309   :  { %v1213_v22 = vrot.slane %v1212_v35, 4 }
 0x30b   :  { %v1214_v32 = vadd.f32 %v1213_v22, %v1212_v35 }
 0x30d   :  { %v1215_v15 = vrot.slane %v1214_v32, 2 }
 0x30f   :  { %v1216_v50 = vadd.f32 %v1215_v15, %v1214_v32 }
 0x311   :  { %v1217_v28 = vrot.slane %v1216_v50, 1 }
 0x313   :  { %v1218_v57 = vadd.f32 %v1217_v28, %v1216_v50 }
 0x315   :  { %1474 = vpush %v1218_v57 }
 0x334   :  { %s1473_s4 = spop %1472 }
 0x346   :  { %s1475_s14 = spop %1474 }
 0x347   :  { %s1220_s15 = sadd.f32 %s1475_s14, %s1473_s4 }
 0x349   :  { %s1223_s18 = smul.f32 0.125, %s1220_s15 }
 0x34b   :  { %v1224_v20 = vstv %s1223_s18 }
 0x34c   :  { %1227 = vst.msk [vmem:[#allocation2] sm:$0x1] %vm1226_vm3, %v1224_v20 }
 0x34d   :  { %1571 = shalt.err (!%p1568_p4)
}
 0x34e   :  { %s1572_s23 = scalar_lea.hbm %s2166_s5, 16 }
 0x34f   :  { %p1573_p5 = scmp.ne.s32.totalorder %s2166_s5, %s1572_s23  ;;  %p1576_p6 = scmp.lt.u32.totalorder %s1572_s23, %s2166_s5 }
 0x351   :  { %p1578_p7 = pnand %p1576_p6, %p1573_p5 }
 0x353   :  { %1581 = shalt.err (!%p1578_p7)
}
 0x354   :  { %1237 = dma.vmem_to_hbm [thread:$0]  %s1235_s17, 16, %s2166_s5, [#allocation3]  }
 0x355   :  { %1582 = dma.done.wait [#allocation3], 16  }
 0x356   :  { %1583 = vsyncadd [#allocation3], 4294967280 }
 0x357   :  { %1241 = vsyncpa [#allocation3], 1 }

</bundles_post_ra>
